<compile_context>
chip_gen: v5e
topology: v5e:2x2
jax: 0.10.0
libtpu: 0.0.40
codegen_flags: <defaults>
</compile_context>

<pallas_src>
import functools

import jax
import jax.numpy as jnp
from jax.experimental import pallas as pl
from jax.experimental.pallas import tpu as pltpu


def _round_up(x, m):
    return ((x + m - 1) // m) * m


def _gelu_exact(x):
    # erf-based gelu (matches transformers' `gelu` used by RobertaLMHead)
    return 0.5 * x * (1.0 + jax.lax.erf(x * 0.7071067811865476))


def _default_vmem_limit_bytes():
    """Per-generation scoped-VMEM limit: ~7/8 of physical, capped at 112 MiB."""
    try:
        cap = int(pltpu.get_tpu_info().vmem_capacity_bytes)
    except Exception:
        return 48 * 1024 * 1024          # conservative fallback (fits v7x)
    return max(32 * 1024 * 1024, min(cap - cap // 8, 112 * 1024 * 1024))


# ---------------------------------------------------------------------------
# Pass 1: h = LayerNorm(gelu(x @ W_dense + b_dense))
# ---------------------------------------------------------------------------
def _dense_gelu_ln_kernel(x_ref, w1_ref, b1_ref, g_ref, beta_ref, h_ref, *,
                          eps, inv_h):
    # Cast the f32 activations to the compute dtype inside the kernel (avoids a
    # separate XLA cast op over x in the wrapper); MXU matmul, f32 accumulation.
    x = x_ref[...].astype(w1_ref.dtype)
    h = jnp.dot(x, w1_ref[...], preferred_element_type=jnp.float32) + b1_ref[...]
    h = _gelu_exact(h)
    # Two-pass LayerNorm statistics in f32 (numerically robust form).
    mean = jnp.sum(h, axis=-1, keepdims=True) * inv_h
    c = h - mean
    var = jnp.sum(c * c, axis=-1, keepdims=True) * inv_h
    h = c * jax.lax.rsqrt(var + eps)
    h = h * g_ref[...] + beta_ref[...]
    h_ref[...] = h.astype(h_ref.dtype)


# ---------------------------------------------------------------------------
# Pass 2: logits = h @ W_dec + b_dec   (vocab axis OUTER => W_dec streams once)
# ---------------------------------------------------------------------------
def _decoder_kernel(h_ref, w2_ref, b2_ref, out_ref):
    out = jnp.dot(h_ref[...], w2_ref[...],
                  preferred_element_type=jnp.float32) + b2_ref[...]
    out_ref[...] = out.astype(out_ref.dtype)


def prepare_lm_head_params(params, *, tv=2048, compute_dtype=jnp.bfloat16):
    """One-time weight prep: cast to compute dtype and pad the vocab axis.

    Run this OUTSIDE the per-step hot path so the f32->bf16 cast and jnp.pad of
    the large [H, V] decoder weight are not re-executed on every forward call.
    """
    H = params["dense_w_t"].shape[0]
    V = params["dec_w_t"].shape[1]
    tv_eff = min(_round_up(tv, 128), _round_up(V, 128))
    V_pad = _round_up(V, tv_eff)

    w2 = params["dec_w_t"].astype(compute_dtype)              # [H, V]
    b2 = params["dec_bias"].astype(jnp.float32).reshape(1, V)
    if V_pad != V:
        w2 = jnp.pad(w2, ((0, 0), (0, V_pad - V)))
        b2 = jnp.pad(b2, ((0, 0), (0, V_pad - V)))

    return {
        "w1": params["dense_w_t"].astype(compute_dtype),      # [H, H]
        "b1": params["dense_b"].astype(jnp.float32).reshape(1, H),
        "gamma": params["ln_gamma"].astype(jnp.float32).reshape(1, H),
        "beta": params["ln_beta"].astype(jnp.float32).reshape(1, H),
        "w2": w2,                                             # [H, V_pad]
        "b2": b2,                                             # [1, V_pad]
        "vocab_size": V,
        "tv": tv_eff,
    }


def roberta_lm_head(features, prep, *, eps=1e-5, tm=512,
                    out_dtype=jnp.bfloat16, vmem_limit_bytes=None):
    """features [B,S,H] -> logits [B,S,V] (out_dtype, default bf16)."""
    B, S, H = features.shape
    T = B * S
    V = prep["vocab_size"]
    tv = prep["tv"]
    V_pad = prep["w2"].shape[1]
    compute_dtype = prep["w1"].dtype

    if vmem_limit_bytes is None:
        vmem_limit_bytes = _default_vmem_limit_bytes()

    # 16-aligned row tile (bf16 packs 16 rows per sublane-packed vreg).
    tm_eff = min(_round_up(tm, 16), _round_up(T, 16))
    T_pad = _round_up(T, tm_eff)

    x = features.reshape(T, H)
    if T_pad != T:
        x = jnp.pad(x, ((0, T_pad - T), (0, 0)))

    n_rows = T_pad // tm_eff
    n_vocab = V_pad // tv

    # ---- pass 1: dense -> gelu -> LayerNorm, h written to HBM in bf16 ------
    h = pl.pallas_call(
        functools.partial(_dense_gelu_ln_kernel, eps=eps, inv_h=1.0 / H),
        out_shape=jax.ShapeDtypeStruct((T_pad, H), compute_dtype),
        grid_spec=pltpu.PrefetchScalarGridSpec(
            num_scalar_prefetch=0,
            grid=(n_rows,),
            in_specs=[
                pl.BlockSpec((tm_eff, H), lambda i: (i, 0)),   # x row tile (f32)
                pl.BlockSpec((H, H), lambda i: (0, 0)),        # W_dense
                pl.BlockSpec((1, H), lambda i: (0, 0)),        # b_dense
                pl.BlockSpec((1, H), lambda i: (0, 0)),        # ln gamma
                pl.BlockSpec((1, H), lambda i: (0, 0)),        # ln beta
            ],
            out_specs=pl.BlockSpec((tm_eff, H), lambda i: (i, 0)),
        ),
        compiler_params=pltpu.CompilerParams(
            dimension_semantics=("parallel",),
            vmem_limit_bytes=vmem_limit_bytes),
    )(x, prep["w1"], prep["b1"], prep["gamma"], prep["beta"])

    # ---- pass 2: decoder projection -----------------------------------------
    # Vocab axis OUTER, row axis inner: the W_dec / b_dec block index only
    # changes with the outer axis, so each W_dec tile is fetched from HBM once
    # and reused across all row tiles.  Every output block is written exactly
    # once (no accumulation), so both axes are "parallel" (megacore-shardable).
    out = pl.pallas_call(
        _decoder_kernel,
        out_shape=jax.ShapeDtypeStruct((T_pad, V_pad), out_dtype),
        grid_spec=pltpu.PrefetchScalarGridSpec(
            num_scalar_prefetch=0,
            grid=(n_vocab, n_rows),
            in_specs=[
                pl.BlockSpec((tm_eff, H), lambda j, i: (i, 0)),  # h row tile
                pl.BlockSpec((H, tv), lambda j, i: (0, j)),      # W_dec tile
                pl.BlockSpec((1, tv), lambda j, i: (0, j)),      # b_dec tile
            ],
            out_specs=pl.BlockSpec((tm_eff, tv), lambda j, i: (i, j)),
        ),
        compiler_params=pltpu.CompilerParams(
            dimension_semantics=("parallel", "parallel"),
            vmem_limit_bytes=vmem_limit_bytes),
    )(h, prep["w2"], prep["b2"])

    if T_pad != T or V_pad != V:
        out = out[:T, :V]
    return out.reshape(B, S, V)


def _reference(features, params, eps=1e-5, compute_dtype=jnp.bfloat16):
    """Pure-JAX reference mirroring the kernel's operand quantization.

    NOTE: mirroring the bf16 operands means this test cannot detect the
    bf16-vs-f32 deviation from the PyTorch module; use compute_dtype=float32
    in prepare_lm_head_params() for a full-precision parity path.
    """
    B, S, H = features.shape
    f32 = jnp.float32
    q = lambda a: a.astype(compute_dtype).astype(f32)
    x = q(features.reshape(B * S, H))
    h = x @ q(params["dense_w_t"]) + params["dense_b"].astype(f32)
    h = _gelu_exact(h)
    mean = jnp.mean(h, axis=-1, keepdims=True)
    var = jnp.mean((h - mean) ** 2, axis=-1, keepdims=True)
    h = (h - mean) * jax.lax.rsqrt(var + eps)
    h = h * params["ln_gamma"] + params["ln_beta"]
    out = q(h) @ q(params["dec_w_t"]) + params["dec_bias"].astype(f32)
    return out.reshape(B, S, -1)


def _make_params(key, H, V):
    k_w1, k_b1, k_g, k_beta, k_w2 = jax.random.split(key, 5)
    dense_w = jax.random.normal(k_w1, (H, H), dtype=jnp.float32) * 0.05
    dense_b = jax.random.normal(k_b1, (H,), dtype=jnp.float32) * 0.01
    ln_gamma = 1.0 + 0.1 * jax.random.normal(k_g, (H,), dtype=jnp.float32)
    ln_beta = 0.01 * jax.random.normal(k_beta, (H,), dtype=jnp.float32)
    dec_w = jax.random.normal(k_w2, (V, H), dtype=jnp.float32) * 0.05
    dec_bias = jnp.zeros((V,), dtype=jnp.float32)   # nn.Parameter(torch.zeros(V))
    return {
        "dense_w_t": dense_w.T,   # [H, H]: x @ dense_w_t == x @ W_dense.T
        "dense_b": dense_b,
        "ln_gamma": ln_gamma,
        "ln_beta": ln_beta,
        "dec_w_t": dec_w.T,       # [H, V]
        "dec_bias": dec_bias,
    }


if __name__ == "__main__":
    eps = 1e-5
    key = jax.random.PRNGKey(0)
    k1, k2, k3, k4 = jax.random.split(key, 4)

    # --- test 1: small config (full-array block path), default bf16 logits ---
    B, S, H, V = 2, 8, 32, 512
    feats = jax.random.normal(k1, (B, S, H), dtype=jnp.float32)
    params = _make_params(k2, H, V)
    prep = prepare_lm_head_params(params)               # tv auto-clamps to 512
    out = roberta_lm_head(feats, prep, eps=eps, tm=64)
    out = jax.block_until_ready(out)
    ref = _reference(feats, params, eps=eps)
    assert out.shape == (B, S, V)
    assert jnp.allclose(out.astype(jnp.float32), ref, atol=2e-2, rtol=2e-2), \
        "test 1 mismatch vs reference"

    # --- test 2: non-divisible T and V, multi-tile grid, f32 logits ----------
    B2, S2, H2, V2 = 2, 24, 256, 1000
    feats2 = jax.random.normal(k3, (B2, S2, H2), dtype=jnp.float32)
    params2 = _make_params(k4, H2, V2)
    prep2 = prepare_lm_head_params(params2, tv=256)     # V padded 1000 -> 1024
    out2 = roberta_lm_head(feats2, prep2, eps=eps, tm=32, out_dtype=jnp.float32)
    out2 = jax.block_until_ready(out2)
    ref2 = _reference(feats2, params2, eps=eps)
    assert out2.shape == (B2, S2, V2)
    assert jnp.allclose(out2, ref2, atol=2e-2, rtol=2e-2), \
        "test 2 mismatch vs reference"

    print("KERNEL_OK")
</pallas_src>

<mosaic_0001>
module attributes {stable_mosaic.version = 11 : i64} {
  func.func @_dense_gelu_ln_kernel(%arg0: i32, %arg1: memref<16x32xf32, #tpu.memory_space<vmem>>, %arg2: memref<32x32xbf16, #tpu.memory_space<vmem>>, %arg3: memref<1x32xf32, #tpu.memory_space<vmem>>, %arg4: memref<1x32xf32, #tpu.memory_space<vmem>>, %arg5: memref<1x32xf32, #tpu.memory_space<vmem>>, %arg6: memref<16x32xbf16, #tpu.memory_space<vmem>>) attributes {dimension_semantics = [#tpu.dimension_semantics<parallel>], iteration_bounds = array<i64: 1>, scalar_prefetch = 0 : i64, scratch_operands = 0 : i64, tpu.core_type = #tpu.core_type<tc>, window_params = [{transform_indices = @transform_0, window_bounds = array<i64: 16, 32>}, {pipeline_mode = #tpu.pipeline_mode<synchronous>, transform_indices = @transform_1, window_bounds = array<i64: 32, 32>}, {pipeline_mode = #tpu.pipeline_mode<synchronous>, transform_indices = @transform_2, window_bounds = array<i64: 1, 32>}, {pipeline_mode = #tpu.pipeline_mode<synchronous>, transform_indices = @transform_3, window_bounds = array<i64: 1, 32>}, {pipeline_mode = #tpu.pipeline_mode<synchronous>, transform_indices = @transform_4, window_bounds = array<i64: 1, 32>}, {transform_indices = @transform_5, window_bounds = array<i64: 16, 32>}]} {
    %c0 = arith.constant 0 : index
    %c0_0 = arith.constant 0 : index
    %0 = vector.load %arg1[%c0, %c0_0] : memref<16x32xf32, #tpu.memory_space<vmem>>, vector<16x32xf32>
    %1 = arith.truncf %0 : vector<16x32xf32> to vector<16x32xbf16>
    %c0_1 = arith.constant 0 : index
    %c0_2 = arith.constant 0 : index
    %2 = vector.load %arg2[%c0_1, %c0_2] : memref<32x32xbf16, #tpu.memory_space<vmem>>, vector<32x32xbf16>
    %cst = arith.constant dense<0.000000e+00> : vector<16x32xf32>
    %3 = tpu.matmul %1, %2, %cst {dimension_numbers = #tpu.dot_dimension_numbers<[1], [0], [0], [1], [0, 0, 1, 1], [], []>} : vector<16x32xbf16>, vector<32x32xbf16>, vector<16x32xf32> -> vector<16x32xf32>
    %c0_3 = arith.constant 0 : index
    %c0_4 = arith.constant 0 : index
    %4 = vector.load %arg3[%c0_3, %c0_4] : memref<1x32xf32, #tpu.memory_space<vmem>>, vector<1x32xf32>
    %5 = vector.broadcast %4 : vector<1x32xf32> to vector<16x32xf32>
    %6 = arith.addf %3, %5 : vector<16x32xf32>
    %cst_5 = arith.constant 5.000000e-01 : f32
    %7 = vector.broadcast %cst_5 : f32 to vector<16x32xf32>
    %8 = arith.mulf %7, %6 : vector<16x32xf32>
    %cst_6 = arith.constant 0.707106769 : f32
    %9 = vector.broadcast %cst_6 : f32 to vector<16x32xf32>
    %10 = arith.mulf %6, %9 : vector<16x32xf32>
    %11 = math.erf %10 : vector<16x32xf32>
    %cst_7 = arith.constant 1.000000e+00 : f32
    %12 = vector.broadcast %cst_7 : f32 to vector<16x32xf32>
    %13 = arith.addf %12, %11 : vector<16x32xf32>
    %14 = arith.mulf %8, %13 : vector<16x32xf32>
    %cst_8 = arith.constant dense<0.000000e+00> : vector<16xf32>
    %15 = vector.multi_reduction <add>, %14, %cst_8 [1] : vector<16x32xf32> to vector<16xf32>
    %16 = vector.shape_cast %15 : vector<16xf32> to vector<16x1xf32>
    %cst_9 = arith.constant 3.125000e-02 : f32
    %17 = vector.broadcast %cst_9 : f32 to vector<16x1xf32>
    %18 = arith.mulf %16, %17 : vector<16x1xf32>
    %19 = vector.broadcast %18 : vector<16x1xf32> to vector<16x32xf32>
    %20 = arith.subf %14, %19 : vector<16x32xf32>
    %21 = arith.mulf %20, %20 : vector<16x32xf32>
    %cst_10 = arith.constant dense<0.000000e+00> : vector<16xf32>
    %22 = vector.multi_reduction <add>, %21, %cst_10 [1] : vector<16x32xf32> to vector<16xf32>
    %23 = vector.shape_cast %22 : vector<16xf32> to vector<16x1xf32>
    %cst_11 = arith.constant 3.125000e-02 : f32
    %24 = vector.broadcast %cst_11 : f32 to vector<16x1xf32>
    %25 = arith.mulf %23, %24 : vector<16x1xf32>
    %cst_12 = arith.constant 9.99999974E-6 : f32
    %26 = vector.broadcast %cst_12 : f32 to vector<16x1xf32>
    %27 = arith.addf %25, %26 : vector<16x1xf32>
    %28 = math.rsqrt %27 : vector<16x1xf32>
    %29 = vector.broadcast %28 : vector<16x1xf32> to vector<16x32xf32>
    %30 = arith.mulf %20, %29 : vector<16x32xf32>
    %c0_13 = arith.constant 0 : index
    %c0_14 = arith.constant 0 : index
    %31 = vector.load %arg4[%c0_13, %c0_14] : memref<1x32xf32, #tpu.memory_space<vmem>>, vector<1x32xf32>
    %32 = vector.broadcast %31 : vector<1x32xf32> to vector<16x32xf32>
    %33 = arith.mulf %30, %32 : vector<16x32xf32>
    %c0_15 = arith.constant 0 : index
    %c0_16 = arith.constant 0 : index
    %34 = vector.load %arg5[%c0_15, %c0_16] : memref<1x32xf32, #tpu.memory_space<vmem>>, vector<1x32xf32>
    %35 = vector.broadcast %34 : vector<1x32xf32> to vector<16x32xf32>
    %36 = arith.addf %33, %35 : vector<16x32xf32>
    %37 = arith.truncf %36 : vector<16x32xf32> to vector<16x32xbf16>
    %c0_17 = arith.constant 0 : index
    %c0_18 = arith.constant 0 : index
    %38 = vector.load %arg6[%c0_17, %c0_18] : memref<16x32xbf16, #tpu.memory_space<vmem>>, vector<16x32xbf16>
    tpu.vector_store %arg6[%c0_17, %c0_18], %37 {strides = array<i32>} : memref<16x32xbf16, #tpu.memory_space<vmem>>, vector<16x32xbf16>,
    return
  }
  func.func @transform_0(%arg0: i32) -> (i32, i32) {
    %c0_i32 = arith.constant 0 : i32
    %c0_i32_0 = arith.constant 0 : i32
    return %arg0, %c0_i32 : i32, i32
  }
  func.func @transform_1(%arg0: i32) -> (i32, i32) {
    %c0_i32 = arith.constant 0 : i32
    %c0_i32_0 = arith.constant 0 : i32
    %c0_i32_1 = arith.constant 0 : i32
    return %c0_i32, %c0_i32_0 : i32, i32
  }
  func.func @transform_2(%arg0: i32) -> (i32, i32) {
    %c0_i32 = arith.constant 0 : i32
    %c0_i32_0 = arith.constant 0 : i32
    %c0_i32_1 = arith.constant 0 : i32
    return %c0_i32, %c0_i32_0 : i32, i32
  }
  func.func @transform_3(%arg0: i32) -> (i32, i32) {
    %c0_i32 = arith.constant 0 : i32
    %c0_i32_0 = arith.constant 0 : i32
    %c0_i32_1 = arith.constant 0 : i32
    return %c0_i32, %c0_i32_0 : i32, i32
  }
  func.func @transform_4(%arg0: i32) -> (i32, i32) {
    %c0_i32 = arith.constant 0 : i32
    %c0_i32_0 = arith.constant 0 : i32
    %c0_i32_1 = arith.constant 0 : i32
    return %c0_i32, %c0_i32_0 : i32, i32
  }
  func.func @transform_5(%arg0: i32) -> (i32, i32) {
    %c0_i32 = arith.constant 0 : i32
    %c0_i32_0 = arith.constant 0 : i32
    return %arg0, %c0_i32 : i32, i32
  }
}

</mosaic_0001>

<bundles_post_ra>
// kernel: tpu_custom_call.1
= control target key start
LH: loop header
LB: loop body
LE: loop exit
PB: predicated region body
PF: predicated region fallthrough
CT: control target
= control target key end

     0   :  { %10 = vsyncpa [#allocation3], 0  ;;  %s452_s0 = inlined_call_operand.hbm [shape: f32[16,32], index: 0, kind: input, shape index: {}]   ;;  %s453_s1 = inlined_call_operand.hbm [shape: bf16[32,32], index: 1, kind: input, shape index: {}]   ;;  %s454_s2 = inlined_call_operand.vmem [shape: f32[1,32], index: 2, kind: input, shape index: {}]   ;;  %s455_s3 = inlined_call_operand.vmem [shape: f32[1,32], index: 3, kind: input, shape index: {}]   ;;  %s456_s4 = inlined_call_operand.vmem [shape: f32[1,32], index: 4, kind: input, shape index: {}]   ;;  %s457_s5 = inlined_call_operand.hbm [shape: bf16[16,32], index: 5, kind: output, shape index: {}]  }
   0x1   :  { %11 = vsyncpa [#allocation6], 0 }
   0x2   :  { %12 = vsyncpa [#allocation4], 0  ;;  %s17_s20 = sshll.u32 %s452_s0, 4  ;;  %s373_s21 = smov [#allocation2]   ;;  %s18_s20 = int_to_ptr.hbm [resolvable:$true] %s17_s20 }
   0x3   :  { %s19_s22 = sshll.u32 %s373_s21, 4  ;;  %s30_s25 = sshll.u32 %s453_s1, 4  ;;  %s20_s22 = int_to_ptr.vmem [resolvable:$true] %s19_s22  ;;  %s31_s25 = int_to_ptr.hbm [resolvable:$true] %s30_s25 }
   0x4   :  { %s374_s26 = smov 128   ;;  %s375_s27 = smov 8  }
   0x5   :  { %25 = dma.hbm_to_vmem [thread:$0]  %s18_s20, 256, %s20_s22, [#allocation3], %s374_s26, %s374_s26, %s375_s27  }
   0x6   :  { %s376_s28 = smov [#allocation5]   ;;  %s377_s30 = smov 64  }
   0x7   :  { %s32_s29 = sshll.u32 %s376_s28, 4  ;;  %s378_s6 = smov 4   ;;  %s33_s29 = int_to_ptr.vmem [resolvable:$true] %s32_s29 }
   0x8   :  { %38 = dma.hbm_to_vmem [thread:$0]  %s31_s25, 256, %s33_s29, [#allocation6], %s377_s30, %s377_s30, %s378_s6  }
   0x9   :  { %367 = dma.done.wait [#allocation3], 256  }
   0xa   :  { %368 = vsyncadd [#allocation3], 4294967040 }
   0xb   :  { %369 = dma.done.wait [#allocation6], 256  }
   0xc   :  { %370 = vsyncadd [#allocation6], 4294967040  ;;  %v276_v0 = vld [vmem:[#allocation5 + $0x8] sm:$0xff]  ;;  %v275_v1 = vld [vmem:[#allocation5] sm:$0xff]  ;;  %vm77_vm0 = vcmask 261120   ;;  %vm241_vm14 = vcmask 257024  }
   0xd   :  { %v54_v2 = vld [vmem:[#allocation2] sm:$0xff]  ;;  %87 = vmatpush.bf16.msra.mxu0 %v276_v0  ;;  %v55_v3 = vld [vmem:[#allocation2 + $0x8] sm:$0xff] }
   0xe   :  { %v56_v4 = vpack.c.bf16 %v55_v3, %v54_v2  ;;  %v284_v5 = vld [vmem:[%s454_s2] ss:$0 sm:$0xff] }
  0x11   :  { %88 = vmatpush.bf16.msra.mxu0 %v275_v1 }
  0x14   :  { %272 = vmatmul.msk.bf16.vlgmr.msra.gmra.mxu0 %vm77_vm0, %v56_v4 }
  0x91   :  { %v90_v6 = vpop.f32.mrf.mxu0 }
  0x92   :  { %v423_v7 = vadd.f32 %v284_v5, %v90_v6 }
  0x94   :  { %v97_v8 = vmul.f32 0.70710677, %v423_v7 }
  0x96   :  { %v99_v9 = vmul.f32 %v97_v8, %v97_v8 }
  0x98   :  { %v100_v10 = vmin.f32 %v99_v9, 16.0 }
  0x99   :  { %v92_v11 = vpop.f32.mrf.mxu0 }
  0x9a   :  { %v101_v12 = vmul.f32 2.1237322e-06, %v100_v10  ;;  %v426_v13 = vadd.f32 %v284_v5, %v92_v11  ;;  %v112_v14 = vmul.f32 3.8918573e-05, %v100_v10 }
  0x9c   :  { %v102_v15 = vadd.f32 0.00028619796, %v101_v12  ;;  %v429_v16 = vmul.f32 0.70710677, %v426_v13  ;;  %v113_v17 = vadd.f32 0.001143296, %v112_v14 }
  0x9e   :  { %v103_v18 = vmul.f32 %v102_v15, %v100_v10  ;;  %v139_v19 = vmul.f32 %v429_v16, %v429_v16  ;;  %v114_v20 = vmul.f32 %v113_v17, %v100_v10  ;;  %v95_v15 = vmul.f32 0.5, %v423_v7 }
  0xa0   :  { %v140_v21 = vmin.f32 %v139_v19, 16.0  ;;  %v115_v22 = vadd.f32 0.014752088, %v114_v20  ;;  %v104_v23 = vadd.f32 0.0036580483, %v103_v18 }
  0xa2   :  { %v141_v24 = vmul.f32 2.1237322e-06, %v140_v21  ;;  %v152_v25 = vmul.f32 3.8918573e-05, %v140_v21  ;;  %v116_v26 = vmul.f32 %v115_v22, %v100_v10  ;;  %v105_v30 = vmul.f32 %v104_v23, %v100_v10 }
  0xa4   :  { %v142_v27 = vadd.f32 0.00028619796, %v141_v24  ;;  %v153_v28 = vadd.f32 0.001143296, %v152_v25  ;;  %v117_v29 = vadd.f32 0.112945676, %v116_v26 }
  0xa5   :  { %v106_v37 = vadd.f32 0.05243302, %v105_v30  ;;  %v96_v25 = vmul.f32 0.5, %v426_v13 }
  0xa6   :  { %v143_v31 = vmul.f32 %v142_v27, %v140_v21  ;;  %v154_v32 = vmul.f32 %v153_v28, %v140_v21  ;;  %v118_v33 = vmul.f32 %v117_v29, %v100_v10 }
  0xa7   :  { %v107_v43 = vmul.f32 %v106_v37, %v100_v10 }
  0xa8   :  { %v155_v34 = vadd.f32 0.014752088, %v154_v32  ;;  %v144_v35 = vadd.f32 0.0036580483, %v143_v31  ;;  %v119_v36 = vadd.f32 0.4994258, %v118_v33 }
  0xa9   :  { %v108_v47 = vadd.f32 0.18741608, %v107_v43 }
  0xaa   :  { %v156_v38 = vmul.f32 %v155_v34, %v140_v21  ;;  %v120_v39 = vmul.f32 %v119_v36, %v100_v10  ;;  %v145_v41 = vmul.f32 %v144_v35, %v140_v21 }
  0xab   :  { %v109_v52 = vmul.f32 %v108_v47, %v100_v10 }
  0xac   :  { %v157_v40 = vadd.f32 0.112945676, %v156_v38  ;;  %v121_v42 = vadd.f32 1.0, %v120_v39  ;;  %v146_v46 = vadd.f32 0.05243302, %v145_v41 }
  0xad   :  { %v110_v57 = vadd.f32 1.1283791, %v109_v52 }
  0xae   :  { %v158_v44 = vmul.f32 %v157_v40, %v140_v21  ;;  %287 = vrcp.f32 %v121_v42  ;;  %v147_v51 = vmul.f32 %v146_v46, %v140_v21  ;;  %v133_v56 = vand.u32 2147483648, %v121_v42 }
  0xaf   :  { %v131_v59 = vand.u32 2147483647, %v121_v42  ;;  %vm127_vm2 = vweird.f32 %v121_v42  ;;  %v111_v1 = vmul.f32 %v110_v57, %v97_v8 }
  0xb0   :  { %v159_v45 = vadd.f32 0.4994258, %v158_v44  ;;  %v148_v55 = vadd.f32 0.18741608, %v147_v51  ;;  %v134_v63 = vor.u32 1.1754944e-38, %v133_v56 }
  0xb1   :  { %vm132_vm4 = vcmp.eq.f32.partialorder %v131_v59, 8.507059e+37 }
  0xb2   :  { %v160_v48 = vmul.f32 %v159_v45, %v140_v21  ;;  %v149_v62 = vmul.f32 %v148_v55, %v140_v21 }
  0xb4   :  { %v161_v49 = vadd.f32 1.0, %v160_v48  ;;  %v288_v50 = vpop.eup %287  ;;  %v150_v9 = vadd.f32 1.1283791, %v149_v62 }
  0xb5   :  { %v123_v53 = vmul.f32 %v288_v50, %v121_v42  ;;  %vm128_vm1 = vweird.f32 %v288_v50 }
  0xb6   :  { %289 = vrcp.f32 %v161_v49  ;;  %vm129_vm3 = vmor %vm127_vm2, %vm128_vm1  ;;  %v173_v6 = vand.u32 2147483648, %v161_v49  ;;  %v171_v11 = vand.u32 2147483647, %v161_v49  ;;  %vm167_vm6 = vweird.f32 %v161_v49 }
  0xb7   :  { %v124_v54 = vsub.f32 1.0, %v123_v53  ;;  %v151_v8 = vmul.f32 %v150_v9, %v429_v16 }
  0xb8   :  { %v174_v18 = vor.u32 1.1754944e-38, %v173_v6  ;;  %vm172_vm8 = vcmp.eq.f32.partialorder %v171_v11, 8.507059e+37 }
  0xb9   :  { %v125_v58 = vmul.f32 %v288_v50, %v124_v54  ;;  %v286_v54 = vld [vmem:[%s456_s4] ss:$0 sm:$0xff]  ;;  %s250_s4 = sshll.u32 %s457_s5, 4  ;;  %s251_s4 = int_to_ptr.hbm [resolvable:$true] %s250_s4 }
  0xbb   :  { %v126_v61 = vadd.f32 %v288_v50, %v125_v58 }
  0xbc   :  { %v290_v60 = vpop.eup %289 }
  0xbd   :  { %v163_v0 = vmul.f32 %v290_v60, %v161_v49  ;;  %v130_v2 = vsel %vm129_vm3, %v288_v50, %v126_v61  ;;  %vm168_vm5 = vweird.f32 %v290_v60  ;;  %v285_v50 = vld [vmem:[%s455_s3] ss:$0 sm:$0xff]  ;;  %s379_s3 = smov [#allocation7]  }
  0xbe   :  { %v135_v3 = vsel %vm132_vm4, %v134_v63, %v130_v2  ;;  %vm169_vm7 = vmor %vm167_vm6, %vm168_vm5  ;;  %s248_s10 = sshll.u32 %s379_s3, 4  ;;  %s249_s10 = int_to_ptr.vmem [resolvable:$true] %s248_s10 }
  0xbf   :  { %v164_v4 = vsub.f32 1.0, %v163_v0  ;;  %v136_v5 = vmul.f32 %v135_v3, %v111_v1 }
  0xc1   :  { %v165_v10 = vmul.f32 %v290_v60, %v164_v4  ;;  %v273_v12 = vclamps-f32 %v136_v5, 1.0 }
  0xc3   :  { %v166_v14 = vadd.f32 %v290_v60, %v165_v10  ;;  %v179_v17 = vadd.f32 1.0, %v273_v12 }
  0xc5   :  { %v170_v19 = vsel %vm169_vm7, %v290_v60, %v166_v14  ;;  %v181_v20 = vmul.f32 %v179_v17, %v95_v15 }
  0xc6   :  { %v175_v21 = vsel %vm172_vm8, %v174_v18, %v170_v19 }
  0xc7   :  { %v176_v22 = vmul.f32 %v175_v21, %v151_v8  ;;  %v183_v23 = vsel %vm77_vm0, %v181_v20, 0.0 }
  0xc8   :  { %184 = vadd.xlane.f32.xlu0 %v183_v23 }
  0xc9   :  { %v274_v24 = vclamps-f32 %v176_v22, 1.0 }
  0xcb   :  { %v180_v26 = vadd.f32 1.0, %v274_v24 }
  0xcd   :  { %v182_v27 = vmul.f32 %v180_v26, %v96_v25 }
  0xcf   :  { %v186_v7 = vsel %vm77_vm0, %v182_v27, 0.0 }
  0xd0   :  { %187 = vadd.xlane.f32.xlu0 %v186_v7 }
 0x13b   :  { %v185_v28 = vpop.xlane.xlu0 %184 }
 0x13c   :  { %v189_v29 = vmul.f32 0.03125, %v185_v28 }
 0x13e   :  { %v191_v30 = vsub.f32 %v181_v20, %v189_v29 }
 0x140   :  { %v193_v16 = vmul.f32 %v191_v30, %v191_v30 }
 0x142   :  { %v195_v31 = vsel %vm77_vm0, %v193_v16, 0.0 }
 0x143   :  { %196 = vadd.xlane.f32.xlu1 %v195_v31  ;;  %v188_v32 = vpop.xlane.xlu0 %187 }
 0x144   :  { %v190_v33 = vmul.f32 0.03125, %v188_v32 }
 0x146   :  { %v192_v34 = vsub.f32 %v182_v27, %v190_v33 }
 0x148   :  { %v194_v35 = vmul.f32 %v192_v34, %v192_v34 }
 0x14a   :  { %v198_v36 = vsel %vm77_vm0, %v194_v35, 0.0 }
 0x14b   :  { %199 = vadd.xlane.f32.xlu1 %v198_v36 }
 0x1b6   :  { %v197_v13 = vpop.xlane.xlu1 %196 }
 0x1b7   :  { %v201_v37 = vmul.f32 0.03125, %v197_v13 }
 0x1b9   :  { %v203_v38 = vadd.f32 1e-05, %v201_v37 }
 0x1bb   :  { %291 = vrsqrt.f32 %v203_v38  ;;  %vm211_vm10 = vweird.f32 %v203_v38 }
 0x1be   :  { %v200_v39 = vpop.xlane.xlu1 %199 }
 0x1bf   :  { %v202_v40 = vmul.f32 0.03125, %v200_v39 }
 0x1c1   :  { %v292_v41 = vpop.eup %291  ;;  %v204_v42 = vadd.f32 1e-05, %v202_v40 }
 0x1c2   :  { %v206_v43 = vmul.f32 %v292_v41, %v203_v38  ;;  %vm212_vm9 = vweird.f32 %v292_v41 }
 0x1c3   :  { %293 = vrsqrt.f32 %v204_v42  ;;  %vm213_vm11 = vmor %vm211_vm10, %vm212_vm9  ;;  %vm221_vm13 = vweird.f32 %v204_v42 }
 0x1c4   :  { %v207_v44 = vmul.f32 %v292_v41, %v206_v43 }
 0x1c6   :  { %v208_v45 = vmul.f32 0.5, %v207_v44 }
 0x1c8   :  { %v209_v46 = vsub.f32 1.5, %v208_v45 }
 0x1c9   :  { %v294_v47 = vpop.eup %293 }
 0x1ca   :  { %v210_v48 = vmul.f32 %v292_v41, %v209_v46  ;;  %v216_v49 = vmul.f32 %v294_v47, %v204_v42  ;;  %vm222_vm12 = vweird.f32 %v294_v47 }
 0x1cb   :  { %vm223_vm15 = vmor %vm221_vm13, %vm222_vm12 }
 0x1cc   :  { %v214_v51 = vsel %vm213_vm11, %v292_v41, %v210_v48  ;;  %v217_v52 = vmul.f32 %v294_v47, %v216_v49 }
 0x1cd   :  { %v225_v53 = vmul.f32 %v214_v51, %v191_v30 }
 0x1ce   :  { %v218_v55 = vmul.f32 0.5, %v217_v52 }
 0x1cf   :  { %v231_v56 = vmul.f32 %v285_v50, %v225_v53 }
 0x1d0   :  { %v219_v57 = vsub.f32 1.5, %v218_v55 }
 0x1d1   :  { %v237_v58 = vadd.f32 %v286_v54, %v231_v56 }
 0x1d2   :  { %v220_v59 = vmul.f32 %v294_v47, %v219_v57 }
 0x1d3   :  { %v239_v60 = vpack.c.bf16 %v237_v58, %v237_v58 }
 0x1d4   :  { %v224_v61 = vsel %vm223_vm15, %v294_v47, %v220_v59 }
 0x1d5   :  { %v226_v62 = vmul.f32 %v224_v61, %v192_v34  ;;  %242 = vst.msk [vmem:[#allocation7] sm:$0xf] %vm241_vm14, %v239_v60 }
 0x1d7   :  { %v232_v63 = vmul.f32 %v285_v50, %v226_v62 }
 0x1d9   :  { %v238_v0 = vadd.f32 %v286_v54, %v232_v63 }
 0x1db   :  { %v240_v1 = vpack.c.bf16 %v238_v0, %v238_v0 }
 0x1dd   :  { %243 = vst.msk [vmem:[#allocation7 + $0x4] sm:$0xf] %vm241_vm14, %v240_v1 }
 0x1de   :  { %256 = dma.vmem_to_hbm [thread:$0]  %s249_s10, 128, %s251_s4, [#allocation4], %s377_s30, %s377_s30, %s378_s6  }
 0x1df   :  { %371 = dma.done.wait [#allocation4], 128  }
 0x1e0   :  { %372 = vsyncadd [#allocation4], 4294967168 }
 0x1e1   :  { %261 = vsyncpa [#allocation3], 1 }
 0x1e2   :  { %262 = vsyncpa [#allocation6], 1 }
 0x1e3   :  { %263 = vsyncpa [#allocation4], 1 }

</bundles_post_ra>
